<compile_context>
chip_gen: v6e
topology: v6e:2x2x1
jax: 0.10.0
libtpu: 0.0.40
codegen_flags: <defaults>
</compile_context>

<pallas_src>
import jax
import jax.numpy as jnp
from jax import lax
from jax.experimental import pallas as pl
from jax.experimental.pallas import tpu as pltpu

TAO = 0.07
INV_TAO = 1.0 / TAO
EPS = 1e-8  # matches torch.nn.functional.cosine_similarity default eps


def contrast_loss_kernel(f1_ref, f2_ref, out_ref):
    f1 = f1_ref[...].astype(jnp.float32)          # (B, D)
    f2 = f2_ref[...].astype(jnp.float32)          # (B, D)
    B = f1.shape[0]

    # scores1[i] = <feat1[i], feat2[i]> / tao  — elementwise mul + lane reduce.
    s1 = jnp.sum(f1 * f2, axis=-1, keepdims=True) * INV_TAO            # (B, 1)

    # Row-normalize feat1 once (EUP rsqrt) instead of dividing the Gram matrix.
    row_sq = jnp.sum(f1 * f1, axis=-1, keepdims=True)                  # (B, 1)
    inv_norm = lax.rsqrt(jnp.maximum(row_sq, EPS * EPS))               # (B, 1)
    f1n = f1 * inv_norm                                                # (B, D)

    # Gram matrix of the normalized rows on the MXU.  Contract on the last dim
    # of BOTH operands (no materialized transpose); 1/tao folded into one side.
    scores2 = lax.dot_general(
        f1n * INV_TAO, f1n,
        dimension_numbers=(((1,), (1,)), ((), ())),
        preferred_element_type=jnp.float32)                            # (B, B)

    # Zero the diagonal (must happen BEFORE the row max: diag/tao would win it).
    row = lax.broadcasted_iota(jnp.int32, (B, B), 0)
    col = lax.broadcasted_iota(jnp.int32, (B, B), 1)
    scores2 = jnp.where(row == col, jnp.float32(0.0), scores2)

    # CrossEntropy with labels == 0, i.e. the "scores1" column:
    #   loss_i = logsumexp([s1_i, scores2_i,:]) - s1_i
    m = jnp.maximum(s1, jnp.max(scores2, axis=-1, keepdims=True))      # (B, 1)
    sum_exp = jnp.exp(s1 - m) + jnp.sum(jnp.exp(scores2 - m),
                                        axis=-1, keepdims=True)        # (B, 1)
    lse = m + jnp.log(sum_exp)                                         # (B, 1)
    per_example = lse - s1                                             # (B, 1)

    out_ref[...] = jnp.sum(per_example, axis=0, keepdims=True) * (1.0 / B)


def contrast_loss(feat1, feat2):
    B, D = feat1.shape
    out = pl.pallas_call(
        contrast_loss_kernel,
        out_shape=jax.ShapeDtypeStruct((1, 1), jnp.float32),
        in_specs=[
            pl.BlockSpec((B, D), lambda: (0, 0)),
            pl.BlockSpec((B, D), lambda: (0, 0)),
        ],
        out_specs=pl.BlockSpec((1, 1), lambda: (0, 0)),
        compiler_params=pltpu.CompilerParams(
            # Raise the scoped VMEM limit above the 16/32 MiB defaults while
            # leaving headroom on v7x (64 MiB physical).
            vmem_limit_bytes=48 * 1024 * 1024,
        ),
    )(feat1, feat2)
    return out[0, 0]


def contrast_loss_ref(feat1, feat2):
    """Pure-JAX reference mirroring the PyTorch module."""
    s1 = jnp.sum(feat1 * feat2, axis=-1, keepdims=True)
    norms = jnp.linalg.norm(feat1, axis=-1, keepdims=True)
    cos = (feat1 @ feat1.T) / jnp.maximum(norms * norms.T, EPS)
    cos = cos - jnp.diag(jnp.diag(cos))
    scores = jnp.concatenate([s1, cos], axis=1) / TAO
    lse = jax.nn.logsumexp(scores, axis=-1)
    return jnp.mean(lse - scores[:, 0])


if __name__ == "__main__":
    B, D = 8, 128
    key = jax.random.PRNGKey(0)
    k1, k2 = jax.random.split(key)
    feat1 = jax.random.normal(k1, (B, D), dtype=jnp.float32)
    feat2 = jax.random.normal(k2, (B, D), dtype=jnp.float32)

    loss = jax.block_until_ready(contrast_loss(feat1, feat2))
    ref = jax.block_until_ready(contrast_loss_ref(feat1, feat2))

    assert jnp.allclose(loss, ref, rtol=1e-4, atol=1e-4), (loss, ref)
    print("KERNEL_OK")
</pallas_src>

<mosaic_0001>
module attributes {stable_mosaic.version = 11 : i64} {
  func.func @contrast_loss_kernel(%arg0: memref<8x128xf32, #tpu.memory_space<vmem>>, %arg1: memref<8x128xf32, #tpu.memory_space<vmem>>, %arg2: memref<1x1xf32, #tpu.memory_space<vmem>>) attributes {dimension_semantics = [], scalar_prefetch = 0 : i64, scratch_operands = 0 : i64, tpu.core_type = #tpu.core_type<tc>} {
    %c0 = arith.constant 0 : index
    %c0_0 = arith.constant 0 : index
    %0 = vector.load %arg0[%c0, %c0_0] : memref<8x128xf32, #tpu.memory_space<vmem>>, vector<8x128xf32>
    %c0_1 = arith.constant 0 : index
    %c0_2 = arith.constant 0 : index
    %1 = vector.load %arg1[%c0_1, %c0_2] : memref<8x128xf32, #tpu.memory_space<vmem>>, vector<8x128xf32>
    %2 = arith.mulf %0, %1 : vector<8x128xf32>
    %cst = arith.constant dense<0.000000e+00> : vector<8xf32>
    %3 = vector.multi_reduction <add>, %2, %cst [1] : vector<8x128xf32> to vector<8xf32>
    %4 = vector.shape_cast %3 : vector<8xf32> to vector<8x1xf32>
    %cst_3 = arith.constant 14.2857141 : f32
    %5 = vector.broadcast %cst_3 : f32 to vector<8x1xf32>
    %6 = arith.mulf %4, %5 : vector<8x1xf32>
    %7 = arith.mulf %0, %0 : vector<8x128xf32>
    %cst_4 = arith.constant dense<0.000000e+00> : vector<8xf32>
    %8 = vector.multi_reduction <add>, %7, %cst_4 [1] : vector<8x128xf32> to vector<8xf32>
    %9 = vector.shape_cast %8 : vector<8xf32> to vector<8x1xf32>
    %cst_5 = arith.constant 1.000000e-16 : f32
    %10 = vector.broadcast %cst_5 : f32 to vector<8x1xf32>
    %11 = arith.maximumf %9, %10 : vector<8x1xf32>
    %12 = math.rsqrt %11 : vector<8x1xf32>
    %13 = vector.broadcast %12 : vector<8x1xf32> to vector<8x128xf32>
    %14 = arith.mulf %0, %13 : vector<8x128xf32>
    %cst_6 = arith.constant 14.2857141 : f32
    %15 = vector.broadcast %cst_6 : f32 to vector<8x128xf32>
    %16 = arith.mulf %14, %15 : vector<8x128xf32>
    %cst_7 = arith.constant dense<0.000000e+00> : vector<8x8xf32>
    %17 = tpu.matmul %16, %14, %cst_7 {dimension_numbers = #tpu.dot_dimension_numbers<[1], [1], [0], [0], [0, 0, 1, 0], [], []>} : vector<8x128xf32>, vector<8x128xf32>, vector<8x8xf32> -> vector<8x8xf32>
    %18 = tpu.iota {dimensions = array<i32: 0>} : vector<8x8xi32>
    %19 = tpu.iota {dimensions = array<i32: 1>} : vector<8x8xi32>
    %20 = arith.cmpi eq, %18, %19 : vector<8x8xi32>
    %cst_8 = arith.constant 0.000000e+00 : f32
    %21 = vector.broadcast %cst_8 : f32 to vector<8x8xf32>
    %22 = arith.select %20, %21, %17 : vector<8x8xi1>, vector<8x8xf32>
    %cst_9 = arith.constant dense<0xFF800000> : vector<8xf32>
    %23 = vector.multi_reduction <maximumf>, %22, %cst_9 [1] : vector<8x8xf32> to vector<8xf32>
    %24 = vector.shape_cast %23 : vector<8xf32> to vector<8x1xf32>
    %25 = arith.maximumf %6, %24 : vector<8x1xf32>
    %26 = arith.subf %6, %25 : vector<8x1xf32>
    %27 = math.exp %26 : vector<8x1xf32>
    %28 = vector.broadcast %25 : vector<8x1xf32> to vector<8x8xf32>
    %29 = arith.subf %22, %28 : vector<8x8xf32>
    %30 = math.exp %29 : vector<8x8xf32>
    %cst_10 = arith.constant dense<0.000000e+00> : vector<8xf32>
    %31 = vector.multi_reduction <add>, %30, %cst_10 [1] : vector<8x8xf32> to vector<8xf32>
    %32 = vector.shape_cast %31 : vector<8xf32> to vector<8x1xf32>
    %33 = arith.addf %27, %32 : vector<8x1xf32>
    %34 = math.log %33 : vector<8x1xf32>
    %35 = arith.addf %25, %34 : vector<8x1xf32>
    %36 = arith.subf %35, %6 : vector<8x1xf32>
    %cst_11 = arith.constant dense<0.000000e+00> : vector<1xf32>
    %37 = vector.multi_reduction <add>, %36, %cst_11 [0] : vector<8x1xf32> to vector<1xf32>
    %38 = vector.shape_cast %37 : vector<1xf32> to vector<1x1xf32>
    %cst_12 = arith.constant 1.250000e-01 : f32
    %39 = vector.broadcast %cst_12 : f32 to vector<1x1xf32>
    %40 = arith.mulf %38, %39 : vector<1x1xf32>
    %c0_13 = arith.constant 0 : index
    %c0_14 = arith.constant 0 : index
    %41 = vector.load %arg2[%c0_13, %c0_14] : memref<1x1xf32, #tpu.memory_space<vmem>>, vector<1x1xf32>
    tpu.vector_store %arg2[%c0_13, %c0_14], %40 {strides = array<i32>} : memref<1x1xf32, #tpu.memory_space<vmem>>, vector<1x1xf32>,
    return
  }
}

</mosaic_0001>

<bundles_post_ra>
// kernel: tpu_custom_call.1
= control target key start
LH: loop header
LB: loop body
LE: loop exit
PB: predicated region body
PF: predicated region fallthrough
CT: control target
= control target key end

     0   :  { %7 = vsyncpa [#allocation3], 0  ;;  %s284_s0 = inlined_call_operand.hbm [shape: f32[8,128], index: 0, kind: input, shape index: {}]   ;;  %s285_s1 = inlined_call_operand.hbm [shape: f32[8,128], index: 1, kind: input, shape index: {}]   ;;  %s286_s2 = inlined_call_operand.hbm [shape: f32[1,1], index: 2, kind: output, shape index: {}]  }
   0x1   :  { %8 = vsyncpa [#allocation6], 0 }
   0x2   :  { %9 = vsyncpa [#allocation4], 0  ;;  %s255_s9 = smov [#allocation2]   ;;  %s256_s11 = smov [#allocation5]  }
   0x3   :  { %s16_s10 = sshll.u32 %s255_s9, 4  ;;  %s26_s12 = sshll.u32 %s256_s11, 4  ;;  %s17_s10 = int_to_ptr.vmem [resolvable:$true] %s16_s10  ;;  %s27_s12 = int_to_ptr.vmem [resolvable:$true] %s26_s12 }
   0x4   :  { %s197_s13 = scalar_lea.vmem %s17_s10, 128  ;;  %p202_p1 = scmp.lt.s32.totalorder %s17_s10, %s17_s10 }
   0x5   :  { %p198_p0 = scmp.ne.s32.totalorder %s17_s10, %s197_s13  ;;  %p203_p2 = scmp.lt.s32.totalorder %s197_s13, %s197_s13 }
   0x7   :  { %p204_p3 = por %p203_p2, %p202_p1 }
   0x9   :  { %p205_p4 = pnand %p204_p3, %p198_p0 }
   0xb   :  { %208 = shalt.err (!%p205_p4)
}
   0xc   :  { %19 = dma.hbm_to_vmem [thread:$0]  %s284_s0, 128, %s17_s10, [#allocation3]  }
   0xd   :  { %s217_s16 = scalar_lea.vmem %s27_s12, 128  ;;  %p222_p6 = scmp.lt.s32.totalorder %s27_s12, %s27_s12 }
   0xe   :  { %p218_p5 = scmp.ne.s32.totalorder %s27_s12, %s217_s16  ;;  %p223_p7 = scmp.lt.s32.totalorder %s217_s16, %s217_s16 }
  0x10   :  { %p224_p8 = por %p223_p7, %p222_p6 }
  0x12   :  { %p225_p9 = pnand %p224_p8, %p218_p5 }
  0x14   :  { %228 = shalt.err (!%p225_p9)
}
  0x15   :  { %29 = dma.hbm_to_vmem [thread:$0]  %s285_s1, 128, %s27_s12, [#allocation6]  }
  0x16   :  { %249 = dma.done.wait [#allocation3], 128  }
  0x17   :  { %250 = vsyncadd [#allocation3], 4294967168 }
  0x18   :  { %251 = dma.done.wait [#allocation6], 128  }
  0x19   :  { %252 = vsyncadd [#allocation6], 4294967168  ;;  %v36_v0 = vld [vmem:[#allocation2] sm:$0xff]  ;;  %v257_v2 = vmov 0.0   ;;  %vm258_vm0 = vmmov 0   ;;  %v37_v8 = vld [vmem:[#allocation5] sm:$0xff]  ;;  %v119_v10 = vlaneseq }
  0x1a   :  { %v42_v1 = vmul.f32 %v36_v0, %v36_v0  ;;  %171 = vmatprep.subr.mxu0 %v257_v2  ;;  %173 = vmatprep.mubr.msk.f32.mxu0 %vm258_vm0, %v257_v2  ;;  %v38_v9 = vmul.f32 %v37_v8, %v36_v0  ;;  %vm125_vm2 = vcmask 64512   ;;  %s259_s0 = smov [#allocation7]   ;;  %vm151_vm3 = vcmask 0  }
  0x1b   :  { %v120_v11 = vshrl.u32 %v119_v10, 7  ;;  %v122_v12 = vand.u32 127, %v119_v10  ;;  %s159_s1 = sshll.u32 %s259_s0, 4  ;;  %s160_s1 = int_to_ptr.vmem [resolvable:$true] %s159_s1 }
  0x1c   :  { %43 = vadd.xlane.f32.xlu0 %v42_v1  ;;  %s229_s19 = scalar_lea.vmem %s160_s1, 16  ;;  %s233_s20 = scalar_lea.vmem %s160_s1, 32 }
  0x1d   :  { %vm123_vm1 = vcmp.eq.s32.totalorder %v120_v11, %v122_v12  ;;  %p230_p10 = scmp.ne.s32.totalorder %s160_s1, %s229_s19  ;;  %p234_p11 = scmp.lt.s32.totalorder %s160_s1, %s160_s1 }
  0x1e   :  { %p235_p12 = scmp.lt.s32.totalorder %s233_s20, %s229_s19 }
  0x20   :  { %39 = vadd.xlane.f32.xlu0 %v38_v9  ;;  %p236_p13 = por %p235_p12, %p234_p11 }
  0x22   :  { %p237_p0 = pnand %p236_p13, %p230_p10 }
  0xa5   :  { %v44_v3 = vpop.xlane.xlu0 %43 }
  0xa6   :  { %v45_v4 = vmax.f32 %v44_v3, 1e-16 }
  0xa8   :  { %181 = vrsqrt.f32 %v45_v4 }
  0xa9   :  { %v40_v17 = vpop.xlane.xlu0 %39 }
  0xaa   :  { %v41_v18 = vmul.f32 14.285714, %v40_v17 }
  0xb5   :  { %v182_v5 = vpop.eup %181 }
  0xb6   :  { %v47_v6 = vmul.f32 %v182_v5, %v36_v0 }
  0xb8   :  { %v48_v7 = vmul.f32 14.285714, %v47_v6  ;;  %172 = vmatpush3.xpose.msra.mxu0 %v47_v6 }
  0xbb   :  { %174 = vmatmul.mubr.f32.vlgmr.msra.gmra.mxu0 %v48_v7 }
 0x17b   :  { %v115_v13 = vpop.f32.mrf.mxu0 }
 0x17c   :  { %v124_v14 = vsel %vm123_vm1, 0.0, %v115_v13 }
 0x17d   :  { %v175_v15 = vpop.f32.mrf.mxu0  ;;  %v126_v16 = vsel %vm125_vm2, %v124_v14, -inf }
 0x17e   :  { %127 = vmax.xlane.f32.xlu1 %v126_v16 }
 0x207   :  { %v128_v19 = vpop.xlane.xlu1 %127 }
 0x208   :  { %v129_v20 = vmax.f32 %v41_v18, %v128_v19 }
 0x20a   :  { %v133_v21 = vsub.f32 %v124_v14, %v129_v20  ;;  %v130_v25 = vsub.f32 %v41_v18, %v129_v20 }
 0x20c   :  { %v134_v22 = vmul.f32 1.442695, %v133_v21  ;;  %v131_v26 = vmul.f32 1.442695, %v130_v25 }
 0x20e   :  { %183 = vpow2.f32 %v134_v22 }
 0x20f   :  { %185 = vpow2.f32 %v131_v26 }
 0x21b   :  { %v184_v23 = vpop.eup %183 }
 0x21c   :  { %v136_v24 = vsel %vm125_vm2, %v184_v23, 0.0  ;;  %v186_v27 = vpop.eup %185 }
 0x21d   :  { %137 = vadd.xlane.f32.xlu1 %v136_v24 }
 0x2a6   :  { %v138_v28 = vpop.xlane.xlu1 %137 }
 0x2a7   :  { %v139_v29 = vadd.f32 %v186_v27, %v138_v28 }
 0x2a9   :  { %187 = vlog2.f32 %v139_v29 }
 0x2b6   :  { %v188_v30 = vpop.eup %187 }
 0x2b7   :  { %v141_v31 = vmul.f32 0.6931472, %v188_v30 }
 0x2b9   :  { %v142_v32 = vadd.f32 %v141_v31, %v129_v20 }
 0x2bb   :  { %v143_v33 = vsub.f32 %v142_v32, %v41_v18 }
 0x2bd   :  { %v144_v34 = vrot.slane %v143_v33, 4 }
 0x2bf   :  { %v145_v35 = vadd.f32 %v144_v34, %v143_v33 }
 0x2c1   :  { %v146_v36 = vrot.slane %v145_v35, 2 }
 0x2c3   :  { %v147_v37 = vadd.f32 %v146_v36, %v145_v35 }
 0x2c5   :  { %v148_v38 = vrot.slane %v147_v37, 1 }
 0x2c7   :  { %v149_v39 = vadd.f32 %v148_v38, %v147_v37 }
 0x2c9   :  { %v150_v40 = vmul.f32 0.125, %v149_v39 }
 0x2cb   :  { %152 = vst.msk [vmem:[#allocation7] sm:$0x1] %vm151_vm3, %v150_v40 }
 0x2cc   :  { %240 = shalt.err (!%p237_p0)
}
 0x2cd   :  { %162 = dma.vmem_to_hbm [thread:$0]  %s160_s1, 16, %s286_s2, [#allocation4]  }
 0x2ce   :  { %253 = dma.done.wait [#allocation4], 16  }
 0x2cf   :  { %254 = vsyncadd [#allocation4], 4294967280 }
 0x2d0   :  { %166 = vsyncpa [#allocation3], 1 }
 0x2d1   :  { %167 = vsyncpa [#allocation6], 1 }
 0x2d2   :  { %168 = vsyncpa [#allocation4], 1 }

</bundles_post_ra>
